<compile_context>
chip_gen: v5e
topology: v5e:2x2
jax: 0.10.0
libtpu: 0.0.40
codegen_flags: <defaults>
</compile_context>

<pallas_src>
import jax
import jax.numpy as jnp
from jax.experimental import pallas as pl
from jax.experimental.pallas import tpu as pltpu


# ---------------------------------------------------------------------------
# Pallas kernel: interleaved 2D-RoPE rotation (single read / single write)
# ---------------------------------------------------------------------------
def _rope2d_kernel(x_ref, cos_ref, sin_ref, o_ref):
    # x_ref / o_ref: (1, TS, D) in the input dtype.
    # cos_ref / sin_ref: (TS, D) float32; the rotation sign is pre-baked into
    # sin (negative at even lanes, positive at odd lanes).
    x = x_ref[0].astype(jnp.float32)                     # (TS, D)
    d = x.shape[-1]
    # Pair partner: x[j+1] at even lanes, x[j-1] at odd lanes (pairs never
    # cross head boundaries because h_d is even).
    fwd = pltpu.roll(x, d - 1, axis=1)                   # fwd[j] = x[(j + 1) % d]
    bwd = pltpu.roll(x, 1, axis=1)                       # bwd[j] = x[(j - 1) % d]
    lane = jax.lax.broadcasted_iota(jnp.int32, x.shape, 1)
    partner = jnp.where((lane & 1) == 0, fwd, bwd)
    out = x * cos_ref[...] + partner * sin_ref[...]
    o_ref[0] = out.astype(o_ref.dtype)


# ---------------------------------------------------------------------------
# Cache construction (mirrors rope_init / build_rope_cache).
# ---------------------------------------------------------------------------
def build_rope_cache(patch_grid_size, dim, base=10000, append_cls_token=True):
    """Per-tile cache: cos, sin of shape [seq_per_tile, dim], dim = h_d // 2."""
    theta = 1.0 / (
        base ** (jnp.arange(0, dim, 2)[: dim // 2].astype(jnp.float32) / dim)
    )  # [dim//2]
    patches_per_tile = patch_grid_size**2
    patch_idx = jnp.arange(patches_per_tile, dtype=jnp.float32)
    if append_cls_token:
        patch_idx = jnp.concatenate([patch_idx, -jnp.ones((1,), jnp.float32)])
    else:
        patch_idx = jnp.concatenate([-jnp.ones((1,), jnp.float32), patch_idx])
    patch_x_pos = jnp.mod(patch_idx, patch_grid_size)
    patch_y_pos = jnp.floor_divide(patch_idx, patch_grid_size)
    x_theta = (patch_x_pos + 1.0)[:, None] * theta[None, :]
    y_theta = (patch_y_pos + 1.0)[:, None] * theta[None, :]
    freqs = jnp.concatenate([x_theta, y_theta], axis=-1)      # [seq_per_tile, dim]
    freqs = jnp.where(patch_idx[:, None] < 0, 0.0, freqs)     # zero RoPE for CLS
    return jnp.cos(freqs), jnp.sin(freqs)


def expand_rope_cache(cos_tile, sin_tile, max_num_tiles, n_h):
    """One-time expansion of the per-tile [seq_per_tile, h_d//2] cache into the
    kernel-ready lane-dense layout [s, n_h*h_d]:
      * each pair value is repeated onto its (even, odd) interleaved lanes,
      * the (-sin, +sin) rotation sign is baked into the sin array,
      * broadcast across heads and tiled across image tiles.
    Done once at init (like the torch module's registered buffer)."""
    _, hd2 = cos_tile.shape
    cos_i = jnp.repeat(cos_tile.astype(jnp.float32), 2, axis=-1)   # [seq, h_d]
    sin_i = jnp.repeat(sin_tile.astype(jnp.float32), 2, axis=-1)   # [seq, h_d]
    sign = jnp.tile(jnp.array([-1.0, 1.0], jnp.float32), hd2)      # -sin @ even lanes
    sin_i = sin_i * sign
    cos_full = jnp.tile(cos_i, (max_num_tiles, n_h))               # [s, n_h*h_d]
    sin_full = jnp.tile(sin_i, (max_num_tiles, n_h))               # [s, n_h*h_d]
    return cos_full, sin_full


# ---------------------------------------------------------------------------
# Tile sizing: largest sequence tile fitting a conservative VMEM budget.
# ---------------------------------------------------------------------------
def _pick_seq_tile(s, d, x_itemsize, vmem_budget_bytes=20 * 1024 * 1024):
    # Per grid step (double-buffered): x + out blocks in the input dtype and
    # cos + sin blocks in f32, each (tile, d).
    per_row = 2 * (2 * d * x_itemsize + 2 * d * 4)
    tile = vmem_budget_bytes // per_row
    if tile >= s:
        return s                                  # full-extent block: always legal
    return max(8, (min(tile, 1024) // 8) * 8)     # multiple of 8 sublanes


# ---------------------------------------------------------------------------
# Wrapper (free reshapes + pallas_call)
# ---------------------------------------------------------------------------
def vision_rope_2d(x, cos_full, sin_full):
    """x: [b, s, n_h, h_d]; cos_full/sin_full: [s, n_h*h_d] from expand_rope_cache."""
    b, s, n_h, h_d = x.shape
    d = n_h * h_d
    if cos_full.shape != (s, d) or sin_full.shape != (s, d):
        raise ValueError(
            f"Input sequence/head layout ({s}, {d}) does not match 2D RoPE "
            f"cache shape {cos_full.shape}."
        )

    x_flat = x.reshape(b, s, d)                   # free contiguous collapse
    ts = _pick_seq_tile(s, d, x.dtype.itemsize)
    grid = (pl.cdiv(s, ts), b)                    # batch innermost: cos/sin stay resident

    out_flat = pl.pallas_call(
        _rope2d_kernel,
        out_shape=jax.ShapeDtypeStruct((b, s, d), x.dtype),
        grid=grid,
        in_specs=[
            pl.BlockSpec((1, ts, d), lambda si, bi: (bi, si, 0)),
            pl.BlockSpec((ts, d), lambda si, bi: (si, 0)),
            pl.BlockSpec((ts, d), lambda si, bi: (si, 0)),
        ],
        out_specs=pl.BlockSpec((1, ts, d), lambda si, bi: (bi, si, 0)),
        compiler_params=pltpu.CompilerParams(
            dimension_semantics=("parallel", "parallel"),
            vmem_limit_bytes=32 * 1024 * 1024,
        ),
    )(x_flat, cos_full, sin_full)
    return out_flat.reshape(b, s, n_h, h_d)


# ---------------------------------------------------------------------------
# Pure-JAX reference (mirrors the torch forward) for correctness checking.
# ---------------------------------------------------------------------------
def vision_rope_2d_ref(x, cos_tile, sin_tile, max_num_tiles):
    b, s, n_h, h_d = x.shape
    hd2 = h_d // 2
    seq_len = s // max_num_tiles
    xshaped = x.astype(jnp.float32).reshape(b, max_num_tiles, seq_len, n_h, hd2, 2)
    cache = jnp.stack([cos_tile, sin_tile], axis=-1)   # [seq_len, hd2, 2]
    rc = cache.reshape(1, 1, seq_len, 1, hd2, 2)
    out = jnp.stack(
        [
            xshaped[..., 0] * rc[..., 0] - xshaped[..., 1] * rc[..., 1],
            xshaped[..., 1] * rc[..., 0] + xshaped[..., 0] * rc[..., 1],
        ],
        axis=-1,
    )
    return out.reshape(b, max_num_tiles * seq_len, n_h, h_d).astype(x.dtype)


if __name__ == "__main__":
    # patch_size=4, tile_size=16 -> patch_grid_size=4 -> 16 patches + 1 CLS = 17
    # max_num_tiles=2 -> s = 34; n_h=4, h_d=32 -> dim = h_d // 2 = 16, D = 128
    patch_size, tile_size, max_num_tiles = 4, 16, 2
    base, append_cls_token = 10000, True
    patch_grid_size = tile_size // patch_size
    seq_per_tile = patch_grid_size**2 + 1

    b, n_h, h_d = 2, 4, 32
    dim = h_d // 2
    s = max_num_tiles * seq_per_tile

    cos_tile, sin_tile = build_rope_cache(
        patch_grid_size, dim, base=base, append_cls_token=append_cls_token
    )
    # One-time, init-style expansion into the kernel-ready lane-dense layout.
    cos_full, sin_full = expand_rope_cache(cos_tile, sin_tile, max_num_tiles, n_h)

    key = jax.random.PRNGKey(0)
    x = jax.random.normal(key, (b, s, n_h, h_d), dtype=jnp.float32)

    rope = jax.jit(vision_rope_2d)
    out = jax.block_until_ready(rope(x, cos_full, sin_full))

    ref = vision_rope_2d_ref(x, cos_tile, sin_tile, max_num_tiles)
    assert out.shape == x.shape and out.dtype == x.dtype
    assert jnp.allclose(out, ref, atol=1e-5, rtol=1e-5)

    print("KERNEL_OK")
</pallas_src>

<mosaic_0001>
module attributes {stable_mosaic.version = 11 : i64} {
  func.func @_rope2d_kernel(%arg0: i32, %arg1: i32, %arg2: memref<1x34x128xf32, #tpu.memory_space<vmem>>, %arg3: memref<34x128xf32, #tpu.memory_space<vmem>>, %arg4: memref<34x128xf32, #tpu.memory_space<vmem>>, %arg5: memref<1x34x128xf32, #tpu.memory_space<vmem>>) attributes {dimension_semantics = [#tpu.dimension_semantics<parallel>, #tpu.dimension_semantics<parallel>], iteration_bounds = array<i64: 1, 2>, scalar_prefetch = 0 : i64, scratch_operands = 0 : i64, tpu.core_type = #tpu.core_type<tc>, window_params = [{transform_indices = @transform_0, window_bounds = array<i64: 1, 34, 128>}, {transform_indices = @transform_1, window_bounds = array<i64: 34, 128>}, {transform_indices = @transform_2, window_bounds = array<i64: 34, 128>}, {transform_indices = @transform_3, window_bounds = array<i64: 1, 34, 128>}]} {
    %c0 = arith.constant 0 : index
    %c0_0 = arith.constant 0 : index
    %c0_1 = arith.constant 0 : index
    %0 = vector.load %arg2[%c0, %c0_0, %c0_1] : memref<1x34x128xf32, #tpu.memory_space<vmem>>, vector<1x34x128xf32>
    %1 = vector.shape_cast %0 : vector<1x34x128xf32> to vector<34x128xf32>
    %c127_i32 = arith.constant 127 : i32
    %2 = tpu.dynamic_rotate %1 by %c127_i32 dim 1 : vector<34x128xf32>, i32 -> vector<34x128xf32>
    %c1_i32 = arith.constant 1 : i32
    %3 = tpu.dynamic_rotate %1 by %c1_i32 dim 1 : vector<34x128xf32>, i32 -> vector<34x128xf32>
    %4 = tpu.iota {dimensions = array<i32: 1>} : vector<34x128xi32>
    %c1_i32_2 = arith.constant 1 : i32
    %5 = vector.broadcast %c1_i32_2 : i32 to vector<34x128xi32>
    %6 = arith.andi %4, %5 : vector<34x128xi32>
    %c0_i32 = arith.constant 0 : i32
    %7 = vector.broadcast %c0_i32 : i32 to vector<34x128xi32>
    %8 = arith.cmpi eq, %6, %7 : vector<34x128xi32>
    %9 = arith.select %8, %2, %3 : vector<34x128xi1>, vector<34x128xf32>
    %c0_3 = arith.constant 0 : index
    %c0_4 = arith.constant 0 : index
    %10 = vector.load %arg3[%c0_3, %c0_4] : memref<34x128xf32, #tpu.memory_space<vmem>>, vector<34x128xf32>
    %11 = arith.mulf %1, %10 : vector<34x128xf32>
    %c0_5 = arith.constant 0 : index
    %c0_6 = arith.constant 0 : index
    %12 = vector.load %arg4[%c0_5, %c0_6] : memref<34x128xf32, #tpu.memory_space<vmem>>, vector<34x128xf32>
    %13 = arith.mulf %9, %12 : vector<34x128xf32>
    %14 = arith.addf %11, %13 : vector<34x128xf32>
    %c0_7 = arith.constant 0 : index
    %c0_8 = arith.constant 0 : index
    %c0_9 = arith.constant 0 : index
    %15 = vector.load %arg5[%c0_7, %c0_8, %c0_9] : memref<1x34x128xf32, #tpu.memory_space<vmem>>, vector<1x34x128xf32>
    %16 = vector.shape_cast %15 : vector<1x34x128xf32> to vector<34x128xf32>
    %17 = vector.shape_cast %14 : vector<34x128xf32> to vector<1x34x128xf32>
    tpu.vector_store %arg5[%c0_7, %c0_8, %c0_9], %17 {strides = array<i32>} : memref<1x34x128xf32, #tpu.memory_space<vmem>>, vector<1x34x128xf32>,
    return
  }
  func.func @transform_0(%arg0: i32, %arg1: i32) -> (i32, i32, i32) {
    %c0_i32 = arith.constant 0 : i32
    %c0_i32_0 = arith.constant 0 : i32
    return %arg1, %arg0, %c0_i32 : i32, i32, i32
  }
  func.func @transform_1(%arg0: i32, %arg1: i32) -> (i32, i32) {
    %c0_i32 = arith.constant 0 : i32
    %c0_i32_0 = arith.constant 0 : i32
    return %arg0, %c0_i32 : i32, i32
  }
  func.func @transform_2(%arg0: i32, %arg1: i32) -> (i32, i32) {
    %c0_i32 = arith.constant 0 : i32
    %c0_i32_0 = arith.constant 0 : i32
    return %arg0, %c0_i32 : i32, i32
  }
  func.func @transform_3(%arg0: i32, %arg1: i32) -> (i32, i32, i32) {
    %c0_i32 = arith.constant 0 : i32
    %c0_i32_0 = arith.constant 0 : i32
    return %arg1, %arg0, %c0_i32 : i32, i32, i32
  }
}

</mosaic_0001>

<bundles_post_ra>
// kernel: vision_rope_2d.1
= control target key start
LH: loop header
LB: loop body
LE: loop exit
PB: predicated region body
PF: predicated region fallthrough
CT: control target
= control target key end

     0   :  { %s519_s12 = smov 0   ;;  %s521_s13 = smov 0   ;;  %s610_s0 = inlined_call_operand.vmem [shape: f32[2,34,128], index: 0, kind: input, shape index: {}]   ;;  %s611_s1 = inlined_call_operand.vmem [shape: f32[34,128], index: 1, kind: input, shape index: {}]   ;;  %s612_s2 = inlined_call_operand.vmem [shape: f32[34,128], index: 2, kind: input, shape index: {}]   ;;  %s613_s3 = inlined_call_operand.vmem [shape: f32[2,34,128], index: 3, kind: output, shape index: {}]  }
   0x1   :  { %s523_s14 = smov 0  }
   0x2 LB: > { %s22_s15 = sadd.s32 1, %s491_s13  ;;  %p441_p0 = scmp.ge.s32.totalorder %s495_s14, 1  ;;  %s495_s14 = sphi %s523_s14, %s13_s14   ;;  %s491_s13 = sphi %s521_s13, %s617_s13   ;;  %s487_s12 = sphi %s519_s12, %s616_s12  }
   0x3   : > { %p23_p1 = scmp.ge.s32.totalorder %s22_s15, 2  ;;  %p180_p2 = scmp.lt.s32.totalorder %s495_s14, 3 }
   0x5   : > { %s619_s15 = smov (%p23_p1, %s22_s15), 0  ;;  %p181_p3 = pnand %p441_p0, %p180_p2 }
   0x6   : > { %p223_p4 = scmp.lt.s32.totalorder (!%p181_p3), %s487_s12, 1  ;;  %s497_s20 = smov (!%p181_p3), 127  }
   0x7   : > { %184 = sbr.rel (%p181_p3) target bundleno = 162 (0xa2), region = 32  ;;  %s498_s21 = smov (!%p181_p3), 1  }
   0xc   : > { %s621_s12 = smov (!%p223_p4, %s487_s12), 1  ;;  %v279_v5 = vlaneseq  ;;  %v288_v9 = vld [vmem:[%s611_s1] sm:$0xff]  ;;  %v291_v19 = vld [vmem:[%s611_s1 + $0x18] sm:$0xff]  ;;  %v290_v28 = vld [vmem:[%s611_s1 + $0x10] sm:$0xff] }
   0xd   : > { %s446_s16 = smul.u32 40, %s621_s12  ;;  %v298_v12 = vld [vmem:[%s612_s2] sm:$0xff]  ;;  %v301_v21 = vld [vmem:[%s612_s2 + $0x18] sm:$0xff]  ;;  %v289_v29 = vld [vmem:[%s611_s1 + $0x8] sm:$0xff] }
   0xe   : > { %v280_v7 = vand.u32 127, %v279_v5  ;;  %v300_v30 = vld [vmem:[%s612_s2 + $0x10] sm:$0xff]  ;;  %v299_v31 = vld [vmem:[%s612_s2 + $0x8] sm:$0xff]  ;;  %v292_v42 = vld [vmem:[%s611_s1 + $0x20] sm:$0x3] }
   0xf   : > { %s230_s19 = scalar_lea.vmem %s610_s0, %s446_s16  ;;  %s562_s28 = scalar_lea.vmem %s613_s3, %s446_s16  ;;  %v302_v43 = vld [vmem:[%s612_s2 + $0x20] sm:$0x3] }
  0x10   : > { %v256_v0 = vld [vmem:[%s230_s19 + $0x10] sm:$0xff]  ;;  %v254_v1 = vld [vmem:[%s230_s19] sm:$0xff]  ;;  %v257_v3 = vld [vmem:[%s230_s19 + $0x18] sm:$0xff]  ;;  %v281_v8 = vand.u32 1, %v280_v7 }
  0x11   : > { %263 = vrot.lane.b32.xlu1 %v256_v0, %s497_s20  ;;  %259 = vrot.lane.b32.xlu0 %v254_v1, %s497_s20  ;;  %v258_v2 = vld [vmem:[%s230_s19 + $0x20] sm:$0x3]  ;;  %v255_v4 = vld [vmem:[%s230_s19 + $0x8] sm:$0xff]  ;;  %v293_v13 = vmul.f32 %v288_v9, %v254_v1  ;;  %v296_v22 = vmul.f32 %v291_v19, %v257_v3  ;;  %v295_v32 = vmul.f32 %v290_v28, %v256_v0 }
  0x12   : > { %267 = vrot.lane.b32.xlu2 %v258_v2, %s497_s20  ;;  %vm548_vm0 = vcmp.eq.s32.totalorder %v281_v8, 0  ;;  %v294_v33 = vmul.f32 %v289_v29, %v255_v4  ;;  %v297_v44 = vmul.f32 %v292_v42, %v258_v2 }
  0x19   : > { %265 = vrot.lane.b32.xlu1 %v257_v3, %s497_s20  ;;  %261 = vrot.lane.b32.xlu0 %v255_v4, %s497_s20 }
  0x1a   : > { %269 = vrot.lane.b32.xlu2 %v254_v1, %s498_s21 }
  0x21   : > { %273 = vrot.lane.b32.xlu1 %v256_v0, %s498_s21  ;;  %271 = vrot.lane.b32.xlu0 %v255_v4, %s498_s21 }
  0x22   : > { %275 = vrot.lane.b32.xlu2 %v257_v3, %s498_s21 }
  0x29   : > { %277 = vrot.lane.b32.xlu0 %v258_v2, %s498_s21 }
  0x6c   : > { %v268_v6 = vpop.permute.xlu2 %267 }
  0x74   : > { %v270_v10 = vpop.permute.xlu2 %269 }
  0x7c   : > { %v276_v20 = vpop.permute.xlu2 %275 }
  0x83   : > { %v264_v14 = vpop.permute.xlu1 %263  ;;  %v260_v15 = vpop.permute.xlu0 %259 }
  0x84   : > { %v283_v16 = vsel %vm548_vm0, %v260_v15, %v270_v10 }
  0x85   : > { %v303_v17 = vmul.f32 %v298_v12, %v283_v16 }
  0x87   : > { %v308_v18 = vadd.f32 %v303_v17, %v293_v13 }
  0x89   : > { %313 = vst [vmem:[%s562_s28] sm:$0xff] %v308_v18 }
  0x8b   : > { %v266_v23 = vpop.permute.xlu1 %265  ;;  %v262_v24 = vpop.permute.xlu0 %261 }
  0x8c   : > { %v286_v25 = vsel %vm548_vm0, %v266_v23, %v276_v20 }
  0x8d   : > { %v306_v26 = vmul.f32 %v301_v21, %v286_v25 }
  0x8f   : > { %v311_v27 = vadd.f32 %v306_v26, %v296_v22 }
  0x91   : > { %316 = vst [vmem:[%s562_s28 + $0x18] sm:$0xff] %v311_v27 }
  0x93   : > { %v274_v34 = vpop.permute.xlu1 %273  ;;  %v272_v35 = vpop.permute.xlu0 %271 }
  0x94   : > { %v285_v36 = vsel %vm548_vm0, %v264_v14, %v274_v34  ;;  %v284_v37 = vsel %vm548_vm0, %v262_v24, %v272_v35 }
  0x95   : > { %v305_v38 = vmul.f32 %v300_v30, %v285_v36  ;;  %v304_v39 = vmul.f32 %v299_v31, %v284_v37 }
  0x97   : > { %v310_v40 = vadd.f32 %v305_v38, %v295_v32  ;;  %v309_v41 = vadd.f32 %v304_v39, %v294_v33 }
  0x99   : > { %315 = vst [vmem:[%s562_s28 + $0x10] sm:$0xff] %v310_v40 }
  0x9a   : > { %314 = vst [vmem:[%s562_s28 + $0x8] sm:$0xff] %v309_v41 }
  0x9b   : > { %v278_v45 = vpop.permute.xlu0 %277 }
  0x9c   : > { %v287_v46 = vsel %vm548_vm0, %v268_v6, %v278_v45 }
  0x9d   : > { %v307_v47 = vmul.f32 %v302_v43, %v287_v46 }
  0x9f   : > { %v312_v48 = vadd.f32 %v307_v47, %v297_v44 }
  0xa1   : > { %317 = vst [vmem:[%s562_s28 + $0x20] sm:$0x3] %v312_v48 }
  0xa2 PF: > { %s13_s14 = sadd.s32 1, %s495_s14   ;;  %s616_s12 = smov %s491_s13 }
  0xa3   : > { %p10_p5 = scmp.ge.s32.totalorder %s13_s14, 4   ;;  %s617_s13 = smov %s619_s15 }
  0xa5   :  { %12 = sbr.rel (!%p10_p5) target bundleno = 2 (0x2), region = 68 }

</bundles_post_ra>
